<compile_context>
chip_gen: v7x
topology: tpu7x:2x2x1
jax: 0.10.0
libtpu: 0.0.40
codegen_flags: <defaults>
</compile_context>

<pallas_src>
import functools
import math

import jax
import jax.numpy as jnp
from jax.experimental import pallas as pl
from jax.experimental.pallas import tpu as pltpu


def _round_up(x, m):
    return ((x + m - 1) // m) * m


def _resblock_kernel(x_ref, g_ref, beta_ref, w1_ref, b1_ref, w2_ref, b2_ref,
                     o_ref, xn_ref, acc_ref, *, eps, n_channels, has_lane_pad,
                     mxu_dtype, gelu_dtype):
    j = pl.program_id(1)

    # ---- first panel step of this row tile: LayerNorm + accumulator init ----
    @pl.when(j == 0)
    def _():
        x = x_ref[...].astype(jnp.float32)
        inv_c = jnp.float32(1.0 / n_channels)
        mean = jnp.sum(x, axis=-1, keepdims=True) * inv_c
        d = x - mean
        if has_lane_pad:
            # zero padded lanes so they do not pollute the variance sum
            lane = jax.lax.broadcasted_iota(jnp.int32, d.shape, 1)
            d = jnp.where(lane < n_channels, d, 0.0)
        var = jnp.sum(d * d, axis=-1, keepdims=True) * inv_c  # two-pass variance
        xn = d * jax.lax.rsqrt(var + jnp.float32(eps))
        xn = xn * g_ref[...] + beta_ref[...]        # padded lanes -> exactly 0
        xn_ref[...] = xn
        acc_ref[...] = xn + b2_ref[...]             # residual + Linear2 bias

    # ---- one hidden-dim panel: acc += GELU(xn @ W1[:,p] + b1[p]) @ W2[p,:] ----
    h = jnp.dot(xn_ref[...].astype(mxu_dtype), w1_ref[...],
                preferred_element_type=jnp.float32) + b1_ref[...]
    h = h.astype(gelu_dtype)
    c0 = jnp.asarray(0.7978845608028654, gelu_dtype)        # sqrt(2/pi)
    c1 = jnp.asarray(0.044715, gelu_dtype)
    h = 0.5 * h * (1.0 + jnp.tanh(c0 * (h + c1 * h * h * h)))  # tanh-approx GELU
    acc_ref[...] += jnp.dot(h.astype(mxu_dtype), w2_ref[...],
                            preferred_element_type=jnp.float32)

    @pl.when(j == pl.num_programs(1) - 1)
    def _():
        o_ref[...] = acc_ref[...].astype(o_ref.dtype)


def prepare_simple_res_block_params(gamma, beta, w1, b1, w2, b2, *,
                                    mxu_dtype=jnp.bfloat16):
    """One-time pad + cast of the parameters (hoisted out of the per-call path).

    w1/w2 are stored (in, out), i.e. nn.Linear.weight.T.  Channels are
    zero-padded to a multiple of 128 so padded lanes stay exactly zero
    through LayerNorm, both matmuls and the residual.
    """
    C = gamma.shape[0]
    Cp = _round_up(C, 128)

    def pad_vec(v):
        return jnp.pad(v.astype(jnp.float32), (0, Cp - C)).reshape(1, Cp)

    def pad_w(w):
        return jnp.pad(w, ((0, Cp - C), (0, Cp - C))).astype(mxu_dtype)

    return dict(channels=C, padded_channels=Cp, mxu_dtype=mxu_dtype,
                gamma=pad_vec(gamma), beta=pad_vec(beta),
                w1=pad_w(w1), b1=pad_vec(b1), w2=pad_w(w2), b2=pad_vec(b2))


def simple_res_block(x, params, *, eps=1e-5, tile_m=None, out_dtype=None,
                     low_precision_gelu=True):
    """x: (B, S, C).  params: output of prepare_simple_res_block_params."""
    C = params["channels"]
    Cp = params["padded_channels"]
    mxu_dtype = params["mxu_dtype"]
    out_dtype = x.dtype if out_dtype is None else out_dtype

    B, S, _ = x.shape
    M = B * S
    Mp = _round_up(M, 8)

    # Only touch x in HBM again if lane/row padding is actually needed.
    if Cp != C or Mp != M:
        x2 = jnp.pad(x.reshape(M, C), ((0, Mp - M), (0, Cp - C)))
    else:
        x2 = x.reshape(M, C)

    # ---- VMEM budget -> weight panel width tn and row tile tm ----
    try:
        vmem_cap = pltpu.get_tpu_info().vmem_capacity_bytes
    except Exception:
        vmem_cap = 64 << 20            # conservative: v7x physical VMEM per TC
    vmem_limit = int(vmem_cap * 3 // 4)
    budget = int(vmem_limit * 0.85)

    x_bytes = jnp.dtype(x.dtype).itemsize
    o_bytes = jnp.dtype(out_dtype).itemsize
    w_bytes = jnp.dtype(mxu_dtype).itemsize

    resident_w = 2 * Cp * Cp * w_bytes          # both weights, single-buffered
    if resident_w <= budget // 2:
        tn = Cp                                  # weights stay fully resident
    else:
        tn = 128                                 # stream weight panels
        for cand in (512, 256):
            if Cp % cand == 0 and 4 * Cp * cand * w_bytes <= budget // 2:
                tn = cand
                break
    n_panels = Cp // tn
    w_vmem = resident_w if n_panels == 1 else 4 * Cp * tn * w_bytes

    # per-row footprint: pipelined x + out, f32 xn/acc scratch, working slabs
    per_row = Cp * (3 * x_bytes + 2 * o_bytes + 4 + 4 + 12)
    tm_cap = max(8, (budget - w_vmem) // per_row)
    if tile_m is None:
        tile_m = 256 if Cp >= 2048 else 512
    tm = max(8, (min(tile_m, tm_cap, Mp) // 8) * 8)

    n_row_tiles = pl.cdiv(Mp, tm)
    const1 = pl.Buffered(1)                            # index never changes
    panel_mode = const1 if n_panels == 1 else None     # panels must dbl-buffer
    # small-Cp compute steps are short -> deeper x pipelining hides DMA latency
    x_mode = pl.Buffered(3) if (Cp <= 512 and n_panels == 1
                                and n_row_tiles > 2) else None

    gelu_dtype = mxu_dtype if low_precision_gelu else jnp.float32
    kernel = functools.partial(
        _resblock_kernel, eps=eps, n_channels=C, has_lane_pad=(Cp != C),
        mxu_dtype=mxu_dtype, gelu_dtype=gelu_dtype)

    cost = pl.CostEstimate(
        flops=4 * Mp * Cp * Cp,
        transcendentals=Mp * Cp,
        bytes_accessed=Mp * Cp * (x_bytes + o_bytes)
                       + 2 * Cp * Cp * w_bytes + 6 * Cp * 4)

    out = pl.pallas_call(
        kernel,
        out_shape=jax.ShapeDtypeStruct((Mp, Cp), out_dtype),
        grid_spec=pltpu.PrefetchScalarGridSpec(
            num_scalar_prefetch=0,
            grid=(n_row_tiles, n_panels),
            in_specs=[
                pl.BlockSpec((tm, Cp), lambda i, j: (i, 0),
                             pipeline_mode=x_mode),           # x rows
                pl.BlockSpec((1, Cp), lambda i, j: (0, 0),
                             pipeline_mode=const1),           # gamma
                pl.BlockSpec((1, Cp), lambda i, j: (0, 0),
                             pipeline_mode=const1),           # beta
                pl.BlockSpec((Cp, tn), lambda i, j: (0, j),
                             pipeline_mode=panel_mode),       # w1 panel (in,out)
                pl.BlockSpec((1, tn), lambda i, j: (0, j),
                             pipeline_mode=panel_mode),       # b1 panel
                pl.BlockSpec((tn, Cp), lambda i, j: (j, 0),
                             pipeline_mode=panel_mode),       # w2 panel (in,out)
                pl.BlockSpec((1, Cp), lambda i, j: (0, 0),
                             pipeline_mode=const1),           # b2
            ],
            out_specs=pl.BlockSpec((tm, Cp), lambda i, j: (i, 0)),
            scratch_shapes=[pltpu.VMEM((tm, Cp), jnp.float32),   # xn (resident)
                            pltpu.VMEM((tm, Cp), jnp.float32)],  # f32 accumulator
        ),
        compiler_params=pltpu.CompilerParams(
            dimension_semantics=("parallel", "arbitrary"),
            vmem_limit_bytes=vmem_limit),
        cost_estimate=cost,
    )(x2, params["gamma"], params["beta"], params["w1"], params["b1"],
      params["w2"], params["b2"])

    if Mp != M or Cp != C:
        out = out[:M, :C]
    return out.reshape(B, S, C)


def _reference(x, gamma, beta, w1, b1, w2, b2, eps=1e-5):
    # Pure-f32 reference of the PyTorch module (exact-erf GELU).
    mean = jnp.mean(x, axis=-1, keepdims=True)
    var = jnp.mean((x - mean) ** 2, axis=-1, keepdims=True)
    xn = (x - mean) / jnp.sqrt(var + eps) * gamma + beta
    h = xn @ w1 + b1
    h = 0.5 * h * (1.0 + jax.lax.erf(h / jnp.sqrt(2.0)))
    return xn + (h @ w2 + b2)


if __name__ == "__main__":
    B, S, C = 2, 8, 32   # small demo shapes: batch=2, seq=8, channels=32
    key = jax.random.PRNGKey(0)
    kx, k1, k2, k3, k4 = jax.random.split(key, 5)

    x = jax.random.normal(kx, (B, S, C), dtype=jnp.float32)

    # Deterministic synthetic parameters (shapes from nn.LayerNorm / nn.Linear;
    # weights stored (in, out) == nn.Linear.weight.T).
    gamma = jnp.ones((C,), jnp.float32)
    beta = jnp.zeros((C,), jnp.float32)
    w1 = jax.random.normal(k1, (C, C), jnp.float32) * (1.0 / math.sqrt(C))
    b1 = jax.random.normal(k2, (C,), jnp.float32) * 0.02
    w2 = jax.random.normal(k3, (C, C), jnp.float32) * (1.0 / math.sqrt(C))
    b2 = jax.random.normal(k4, (C,), jnp.float32) * 0.02

    params = prepare_simple_res_block_params(gamma, beta, w1, b1, w2, b2)
    out = simple_res_block(x, params)
    out = jax.block_until_ready(out)

    ref = _reference(x, gamma, beta, w1, b1, w2, b2)
    assert out.shape == (B, S, C)
    # Tolerance covers bf16 MXU operands + tanh-approx GELU vs exact erf.
    assert jnp.allclose(out, ref, atol=5e-2, rtol=5e-2), "mismatch vs reference"

    print("KERNEL_OK")
</pallas_src>

<mosaic_0001>
module attributes {stable_mosaic.version = 11 : i64} {
  func.func @_resblock_kernel(%arg0: i32, %arg1: i32, %arg2: memref<16x128xf32, #tpu.memory_space<vmem>>, %arg3: memref<1x128xf32, #tpu.memory_space<vmem>>, %arg4: memref<1x128xf32, #tpu.memory_space<vmem>>, %arg5: memref<128x128xbf16, #tpu.memory_space<vmem>>, %arg6: memref<1x128xf32, #tpu.memory_space<vmem>>, %arg7: memref<128x128xbf16, #tpu.memory_space<vmem>>, %arg8: memref<1x128xf32, #tpu.memory_space<vmem>>, %arg9: memref<16x128xf32, #tpu.memory_space<vmem>>, %arg10: memref<16x128xf32, #tpu.memory_space<vmem>>, %arg11: memref<16x128xf32, #tpu.memory_space<vmem>>) attributes {dimension_semantics = [#tpu.dimension_semantics<parallel>, #tpu.dimension_semantics<arbitrary>], iteration_bounds = array<i64: 1, 1>, scalar_prefetch = 0 : i64, scratch_operands = 2 : i64, tpu.core_type = #tpu.core_type<tc>, window_params = [{transform_indices = @transform_0, window_bounds = array<i64: 16, 128>}, {pipeline_mode = #tpu.pipeline_mode<synchronous>, transform_indices = @transform_1, window_bounds = array<i64: 1, 128>}, {pipeline_mode = #tpu.pipeline_mode<synchronous>, transform_indices = @transform_2, window_bounds = array<i64: 1, 128>}, {pipeline_mode = #tpu.pipeline_mode<synchronous>, transform_indices = @transform_3, window_bounds = array<i64: 128, 128>}, {pipeline_mode = #tpu.pipeline_mode<synchronous>, transform_indices = @transform_4, window_bounds = array<i64: 1, 128>}, {pipeline_mode = #tpu.pipeline_mode<synchronous>, transform_indices = @transform_5, window_bounds = array<i64: 128, 128>}, {pipeline_mode = #tpu.pipeline_mode<synchronous>, transform_indices = @transform_6, window_bounds = array<i64: 1, 128>}, {transform_indices = @transform_7, window_bounds = array<i64: 16, 128>}]} {
    %c0_i32 = arith.constant 0 : i32
    %0 = arith.cmpi eq, %arg1, %c0_i32 : i32
    %1 = arith.extui %0 : i1 to i32
    %c0_i32_0 = arith.constant 0 : i32
    %2 = arith.cmpi ne, %1, %c0_i32_0 : i32
    scf.if %2 {
      %c0_19 = arith.constant 0 : index
      %c0_20 = arith.constant 0 : index
      %32 = vector.load %arg2[%c0_19, %c0_20] : memref<16x128xf32, #tpu.memory_space<vmem>>, vector<16x128xf32>
      %cst_21 = arith.constant dense<0.000000e+00> : vector<16xf32>
      %33 = vector.multi_reduction <add>, %32, %cst_21 [1] : vector<16x128xf32> to vector<16xf32>
      %34 = vector.shape_cast %33 : vector<16xf32> to vector<16x1xf32>
      %cst_22 = arith.constant 3.125000e-02 : f32
      %35 = vector.broadcast %cst_22 : f32 to vector<16x1xf32>
      %36 = arith.mulf %34, %35 : vector<16x1xf32>
      %37 = vector.broadcast %36 : vector<16x1xf32> to vector<16x128xf32>
      %38 = arith.subf %32, %37 : vector<16x128xf32>
      %39 = tpu.iota {dimensions = array<i32: 1>} : vector<16x128xi32>
      %c32_i32 = arith.constant 32 : i32
      %40 = vector.broadcast %c32_i32 : i32 to vector<16x128xi32>
      %41 = arith.cmpi slt, %39, %40 : vector<16x128xi32>
      %cst_23 = arith.constant 0.000000e+00 : f32
      %42 = vector.broadcast %cst_23 : f32 to vector<16x128xf32>
      %43 = arith.select %41, %38, %42 : vector<16x128xi1>, vector<16x128xf32>
      %44 = arith.mulf %43, %43 : vector<16x128xf32>
      %cst_24 = arith.constant dense<0.000000e+00> : vector<16xf32>
      %45 = vector.multi_reduction <add>, %44, %cst_24 [1] : vector<16x128xf32> to vector<16xf32>
      %46 = vector.shape_cast %45 : vector<16xf32> to vector<16x1xf32>
      %cst_25 = arith.constant 3.125000e-02 : f32
      %47 = vector.broadcast %cst_25 : f32 to vector<16x1xf32>
      %48 = arith.mulf %46, %47 : vector<16x1xf32>
      %cst_26 = arith.constant 9.99999974E-6 : f32
      %49 = vector.broadcast %cst_26 : f32 to vector<16x1xf32>
      %50 = arith.addf %48, %49 : vector<16x1xf32>
      %51 = math.rsqrt %50 : vector<16x1xf32>
      %52 = vector.broadcast %51 : vector<16x1xf32> to vector<16x128xf32>
      %53 = arith.mulf %43, %52 : vector<16x128xf32>
      %c0_27 = arith.constant 0 : index
      %c0_28 = arith.constant 0 : index
      %54 = vector.load %arg3[%c0_27, %c0_28] : memref<1x128xf32, #tpu.memory_space<vmem>>, vector<1x128xf32>
      %55 = vector.broadcast %54 : vector<1x128xf32> to vector<16x128xf32>
      %56 = arith.mulf %53, %55 : vector<16x128xf32>
      %c0_29 = arith.constant 0 : index
      %c0_30 = arith.constant 0 : index
      %57 = vector.load %arg4[%c0_29, %c0_30] : memref<1x128xf32, #tpu.memory_space<vmem>>, vector<1x128xf32>
      %58 = vector.broadcast %57 : vector<1x128xf32> to vector<16x128xf32>
      %59 = arith.addf %56, %58 : vector<16x128xf32>
      %c0_31 = arith.constant 0 : index
      %c0_32 = arith.constant 0 : index
      %60 = vector.load %arg10[%c0_31, %c0_32] : memref<16x128xf32, #tpu.memory_space<vmem>>, vector<16x128xf32>
      tpu.vector_store %arg10[%c0_31, %c0_32], %59 {strides = array<i32>} : memref<16x128xf32, #tpu.memory_space<vmem>>, vector<16x128xf32>,
      %c0_33 = arith.constant 0 : index
      %c0_34 = arith.constant 0 : index
      %61 = vector.load %arg8[%c0_33, %c0_34] : memref<1x128xf32, #tpu.memory_space<vmem>>, vector<1x128xf32>
      %62 = vector.broadcast %61 : vector<1x128xf32> to vector<16x128xf32>
      %63 = arith.addf %59, %62 : vector<16x128xf32>
      %c0_35 = arith.constant 0 : index
      %c0_36 = arith.constant 0 : index
      %64 = vector.load %arg11[%c0_35, %c0_36] : memref<16x128xf32, #tpu.memory_space<vmem>>, vector<16x128xf32>
      tpu.vector_store %arg11[%c0_35, %c0_36], %63 {strides = array<i32>} : memref<16x128xf32, #tpu.memory_space<vmem>>, vector<16x128xf32>,
    } else {
    }
    %c0 = arith.constant 0 : index
    %c0_1 = arith.constant 0 : index
    %3 = vector.load %arg10[%c0, %c0_1] : memref<16x128xf32, #tpu.memory_space<vmem>>, vector<16x128xf32>
    %4 = arith.truncf %3 : vector<16x128xf32> to vector<16x128xbf16>
    %c0_2 = arith.constant 0 : index
    %c0_3 = arith.constant 0 : index
    %5 = vector.load %arg5[%c0_2, %c0_3] : memref<128x128xbf16, #tpu.memory_space<vmem>>, vector<128x128xbf16>
    %cst = arith.constant dense<0.000000e+00> : vector<16x128xf32>
    %6 = tpu.matmul %4, %5, %cst {dimension_numbers = #tpu.dot_dimension_numbers<[1], [0], [0], [1], [0, 0, 1, 1], [], []>} : vector<16x128xbf16>, vector<128x128xbf16>, vector<16x128xf32> -> vector<16x128xf32>
    %c0_4 = arith.constant 0 : index
    %c0_5 = arith.constant 0 : index
    %7 = vector.load %arg6[%c0_4, %c0_5] : memref<1x128xf32, #tpu.memory_space<vmem>>, vector<1x128xf32>
    %8 = vector.broadcast %7 : vector<1x128xf32> to vector<16x128xf32>
    %9 = arith.addf %6, %8 : vector<16x128xf32>
    %10 = arith.truncf %9 : vector<16x128xf32> to vector<16x128xbf16>
    %cst_6 = arith.constant 5.000000e-01 : bf16
    %11 = vector.broadcast %cst_6 : bf16 to vector<16x128xbf16>
    %12 = arith.mulf %11, %10 : vector<16x128xbf16>
    %cst_7 = arith.constant 4.467770e-02 : bf16
    %13 = vector.broadcast %cst_7 : bf16 to vector<16x128xbf16>
    %14 = arith.mulf %13, %10 : vector<16x128xbf16>
    %15 = arith.mulf %14, %10 : vector<16x128xbf16>
    %16 = arith.mulf %15, %10 : vector<16x128xbf16>
    %17 = arith.addf %10, %16 : vector<16x128xbf16>
    %cst_8 = arith.constant 7.968750e-01 : bf16
    %18 = vector.broadcast %cst_8 : bf16 to vector<16x128xbf16>
    %19 = arith.mulf %18, %17 : vector<16x128xbf16>
    %20 = math.tanh %19 : vector<16x128xbf16>
    %cst_9 = arith.constant 1.000000e+00 : bf16
    %21 = vector.broadcast %cst_9 : bf16 to vector<16x128xbf16>
    %22 = arith.addf %21, %20 : vector<16x128xbf16>
    %23 = arith.mulf %12, %22 : vector<16x128xbf16>
    %c0_10 = arith.constant 0 : index
    %c0_11 = arith.constant 0 : index
    %24 = vector.load %arg11[%c0_10, %c0_11] : memref<16x128xf32, #tpu.memory_space<vmem>>, vector<16x128xf32>
    %c0_12 = arith.constant 0 : index
    %c0_13 = arith.constant 0 : index
    %25 = vector.load %arg7[%c0_12, %c0_13] : memref<128x128xbf16, #tpu.memory_space<vmem>>, vector<128x128xbf16>
    %cst_14 = arith.constant dense<0.000000e+00> : vector<16x128xf32>
    %26 = tpu.matmul %23, %25, %cst_14 {dimension_numbers = #tpu.dot_dimension_numbers<[1], [0], [0], [1], [0, 0, 1, 1], [], []>} : vector<16x128xbf16>, vector<128x128xbf16>, vector<16x128xf32> -> vector<16x128xf32>
    %27 = arith.addf %24, %26 : vector<16x128xf32>
    %c0_15 = arith.constant 0 : index
    %c0_16 = arith.constant 0 : index
    %28 = vector.load %arg11[%c0_15, %c0_16] : memref<16x128xf32, #tpu.memory_space<vmem>>, vector<16x128xf32>
    tpu.vector_store %arg11[%c0_15, %c0_16], %27 {strides = array<i32>} : memref<16x128xf32, #tpu.memory_space<vmem>>, vector<16x128xf32>,
    %c0_i32_17 = arith.constant 0 : i32
    %29 = arith.cmpi eq, %arg1, %c0_i32_17 : i32
    %30 = arith.extui %29 : i1 to i32
    %c0_i32_18 = arith.constant 0 : i32
    %31 = arith.cmpi ne, %30, %c0_i32_18 : i32
    scf.if %31 {
      %c0_19 = arith.constant 0 : index
      %c0_20 = arith.constant 0 : index
      %32 = vector.load %arg11[%c0_19, %c0_20] : memref<16x128xf32, #tpu.memory_space<vmem>>, vector<16x128xf32>
      %c0_21 = arith.constant 0 : index
      %c0_22 = arith.constant 0 : index
      %33 = vector.load %arg9[%c0_21, %c0_22] : memref<16x128xf32, #tpu.memory_space<vmem>>, vector<16x128xf32>
      tpu.vector_store %arg9[%c0_21, %c0_22], %32 {strides = array<i32>} : memref<16x128xf32, #tpu.memory_space<vmem>>, vector<16x128xf32>,
    } else {
    }
    return
  }
  func.func @transform_0(%arg0: i32, %arg1: i32) -> (i32, i32) {
    %c0_i32 = arith.constant 0 : i32
    %c0_i32_0 = arith.constant 0 : i32
    return %arg0, %c0_i32 : i32, i32
  }
  func.func @transform_1(%arg0: i32, %arg1: i32) -> (i32, i32) {
    %c0_i32 = arith.constant 0 : i32
    %c0_i32_0 = arith.constant 0 : i32
    %c0_i32_1 = arith.constant 0 : i32
    return %c0_i32, %c0_i32_0 : i32, i32
  }
  func.func @transform_2(%arg0: i32, %arg1: i32) -> (i32, i32) {
    %c0_i32 = arith.constant 0 : i32
    %c0_i32_0 = arith.constant 0 : i32
    %c0_i32_1 = arith.constant 0 : i32
    return %c0_i32, %c0_i32_0 : i32, i32
  }
  func.func @transform_3(%arg0: i32, %arg1: i32) -> (i32, i32) {
    %c0_i32 = arith.constant 0 : i32
    %c0_i32_0 = arith.constant 0 : i32
    return %c0_i32, %arg1 : i32, i32
  }
  func.func @transform_4(%arg0: i32, %arg1: i32) -> (i32, i32) {
    %c0_i32 = arith.constant 0 : i32
    %c0_i32_0 = arith.constant 0 : i32
    return %c0_i32, %arg1 : i32, i32
  }
  func.func @transform_5(%arg0: i32, %arg1: i32) -> (i32, i32) {
    %c0_i32 = arith.constant 0 : i32
    %c0_i32_0 = arith.constant 0 : i32
    return %arg1, %c0_i32 : i32, i32
  }
  func.func @transform_6(%arg0: i32, %arg1: i32) -> (i32, i32) {
    %c0_i32 = arith.constant 0 : i32
    %c0_i32_0 = arith.constant 0 : i32
    %c0_i32_1 = arith.constant 0 : i32
    return %c0_i32, %c0_i32_0 : i32, i32
  }
  func.func @transform_7(%arg0: i32, %arg1: i32) -> (i32, i32) {
    %c0_i32 = arith.constant 0 : i32
    %c0_i32_0 = arith.constant 0 : i32
    return %arg0, %c0_i32 : i32, i32
  }
}

</mosaic_0001>

<bundles_post_ra>
// kernel: tpu_custom_call.1
= control target key start
LH: loop header
LB: loop body
LE: loop exit
PB: predicated region body
PF: predicated region fallthrough
CT: control target
= control target key end

     0   :  { %12 = vsyncpa [#allocation5], 0  ;;  %s742_s0 = inlined_call_operand.hbm [shape: f32[16,128], index: 0, kind: input, shape index: {}]   ;;  %s743_s1 = inlined_call_operand.vmem [shape: f32[1,128], index: 1, kind: input, shape index: {}]   ;;  %s744_s2 = inlined_call_operand.vmem [shape: f32[1,128], index: 2, kind: input, shape index: {}]   ;;  %s745_s3 = inlined_call_operand.hbm [shape: bf16[128,128], index: 3, kind: input, shape index: {}]   ;;  %s746_s4 = inlined_call_operand.vmem [shape: f32[1,128], index: 4, kind: input, shape index: {}]   ;;  %s747_s5 = inlined_call_operand.hbm [shape: bf16[128,128], index: 5, kind: input, shape index: {}]   ;;  %s748_s6 = inlined_call_operand.vmem [shape: f32[1,128], index: 6, kind: input, shape index: {}]   ;;  %s749_s7 = inlined_call_operand.hbm [shape: f32[16,128], index: 7, kind: output, shape index: {}]  }
   0x1   :  { %13 = vsyncpa [#allocation8], 0 }
   0x2   :  { %14 = vsyncpa [#allocation6], 0  ;;  %s602_s24 = smov [#allocation7]   ;;  %s508_s28 = scalar_lea.hbm %s745_s3, 1024 }
   0x3   :  { %s36_s25 = sshll.u32 %s602_s24, 4  ;;  %p509_p0 = scmp.ne.s32.totalorder %s745_s3, %s508_s28  ;;  %s37_s25 = int_to_ptr.vmem [resolvable:$true] %s36_s25 }
   0x4   :  { %p512_p1 = scmp.lt.u32.totalorder %s508_s28, %s745_s3 }
   0x6   :  { %p514_p2 = pnand %p512_p1, %p509_p0 }
   0x8   :  { %517 = shalt.err (!%p514_p2)
}
   0x9   :  { %s518_s10 = scalar_lea.vmem %s37_s25, 1024  ;;  %p523_p4 = scmp.lt.s32.totalorder %s37_s25, %s37_s25 }
   0xa   :  { %p519_p3 = scmp.ne.s32.totalorder %s37_s25, %s518_s10  ;;  %p524_p5 = scmp.lt.s32.totalorder %s518_s10, %s518_s10 }
   0xc   :  { %p525_p6 = por %p524_p5, %p523_p4 }
   0xe   :  { %p526_p7 = pnand %p525_p6, %p519_p3 }
  0x10   :  { %529 = shalt.err (!%p526_p7)
}
  0x11   :  { %s603_s11 = smov 64   ;;  %s604_s12 = smov 4  }
  0x12   :  { %42 = dma.hbm_to_vmem [thread:$0]  %s745_s3, 1024, %s37_s25, [#allocation8], %s603_s11, %s603_s11, %s604_s12  }
  0x13   :  { %s605_s15 = smov [#allocation4]   ;;  %s530_s19 = scalar_lea.hbm %s742_s0, 256 }
  0x14   :  { %s20_s16 = sshll.u32 %s605_s15, 4  ;;  %p531_p8 = scmp.ne.s32.totalorder %s742_s0, %s530_s19  ;;  %s21_s16 = int_to_ptr.vmem [resolvable:$true] %s20_s16 }
  0x15   :  { %p534_p9 = scmp.lt.u32.totalorder %s530_s19, %s742_s0 }
  0x17   :  { %p536_p10 = pnand %p534_p9, %p531_p8 }
  0x19   :  { %539 = shalt.err (!%p536_p10)
}
  0x1a   :  { %s540_s24 = scalar_lea.vmem %s21_s16, 256  ;;  %p545_p12 = scmp.lt.s32.totalorder %s21_s16, %s21_s16 }
  0x1b   :  { %p541_p11 = scmp.ne.s32.totalorder %s21_s16, %s540_s24  ;;  %p546_p13 = scmp.lt.s32.totalorder %s540_s24, %s540_s24 }
  0x1d   :  { %p547_p0 = por %p546_p13, %p545_p12 }
  0x1f   :  { %p548_p1 = pnand %p547_p0, %p541_p11 }
  0x21   :  { %551 = shalt.err (!%p548_p1)
}
  0x22   :  { %s606_s3 = smov 128   ;;  %s607_s25 = smov 8  }
  0x23   :  { %26 = dma.hbm_to_vmem [thread:$0]  %s742_s0, 256, %s21_s16, [#allocation5], %s606_s3, %s606_s3, %s607_s25  }
  0x24   :  { %s608_s28 = smov [#allocation9]   ;;  %s552_s9 = scalar_lea.hbm %s747_s5, 1024 }
  0x25   :  { %s50_s29 = sshll.u32 %s608_s28, 4  ;;  %p553_p2 = scmp.ne.s32.totalorder %s747_s5, %s552_s9  ;;  %s51_s29 = int_to_ptr.vmem [resolvable:$true] %s50_s29 }
  0x26   :  { %p556_p3 = scmp.lt.u32.totalorder %s552_s9, %s747_s5 }
  0x28   :  { %p558_p4 = pnand %p556_p3, %p553_p2 }
  0x2a   :  { %561 = shalt.err (!%p558_p4)
}
  0x2b   :  { %s562_s17 = scalar_lea.vmem %s51_s29, 1024  ;;  %p567_p6 = scmp.lt.s32.totalorder %s51_s29, %s51_s29 }
  0x2c   :  { %p563_p5 = scmp.ne.s32.totalorder %s51_s29, %s562_s17  ;;  %p568_p7 = scmp.lt.s32.totalorder %s562_s17, %s562_s17 }
  0x2e   :  { %p569_p8 = por %p568_p7, %p567_p6 }
  0x30   :  { %p570_p9 = pnand %p569_p8, %p563_p5 }
  0x32   :  { %573 = shalt.err (!%p570_p9)
}
  0x33   :  { %56 = dma.hbm_to_vmem [thread:$0]  %s747_s5, 1024, %s51_s29, [#allocation8], %s603_s11, %s603_s11, %s604_s12  }
  0x34   :  { %596 = dma.done.wait [#allocation5], 256  }
  0x35   :  { %597 = vsyncadd [#allocation5], 4294967040 }
  0x36   :  { %598 = dma.done.wait [#allocation8], 2048  }
  0x37   :  { %599 = vsyncadd [#allocation8], 4294965248  ;;  %v77_v0 = vld [vmem:[#allocation4] sm:$0xff]  ;;  %v78_v1 = vld [vmem:[#allocation4 + $0x8] sm:$0xff]  ;;  %v609_v3 = vmov 0.0   ;;  %v87_v4 = vlaneseq  ;;  %vm610_vm1 = vmmov 0  }
  0x38   :  { %79 = vadd.xlane.f32.xlu0 %v77_v0  ;;  %v486_v2 = vld [vmem:[#allocation7] sm:$0xff]   ;;  %436 = vmatprep.subr.bf16.mxu0 %v609_v3  ;;  %v487_v16 = vld [vmem:[#allocation7 + $0x8] sm:$0xff]   ;;  %v488_v17 = vld [vmem:[#allocation7 + $0x10] sm:$0xff]   ;;  %s611_s20 = smov [#allocation10]  }
  0x39   :  { %456 = vmatprep.subr.bf16.mxu1 %v609_v3  ;;  %437 = vmatpush3.bf16.msra.mxu0 %v486_v2  ;;  %v88_v5 = vand.u32 127, %v87_v4  ;;  %v489_v18 = vld [vmem:[#allocation7 + $0x18] sm:$0xff]   ;;  %v490_v19 = vld [vmem:[#allocation7 + $0x20] sm:$0xff]   ;;  %v491_v20 = vld [vmem:[#allocation7 + $0x28] sm:$0xff]   ;;  %s385_s21 = sshll.u32 %s611_s20, 4  ;;  %s386_s21 = int_to_ptr.vmem [resolvable:$true] %s385_s21 }
  0x3a   :  { %438 = vmatprep.subr.bf16.mxu0 %v609_v3  ;;  %452 = vmatprep.mubr.msk.bf16.mxu0 %vm610_vm1, %v609_v3  ;;  %v492_v21 = vld [vmem:[#allocation7 + $0x30] sm:$0xff]   ;;  %v493_v22 = vld [vmem:[#allocation7 + $0x38] sm:$0xff]   ;;  %v494_v40 = vld [vmem:[#allocation9] sm:$0xff]   ;;  %s574_s22 = scalar_lea.vmem %s386_s21, 256  ;;  %p579_p11 = scmp.lt.s32.totalorder %s386_s21, %s386_s21 }
  0x3b   :  { %vm89_vm0 = vcmp.lt.s32.totalorder %v88_v5, 32  ;;  %472 = vmatprep.mubr.msk.bf16.mxu1 %vm610_vm1, %v609_v3  ;;  %v398_v31 = vld [vmem:[%s743_s1] ss:$0 sm:$0xff]  ;;  %457 = vmatpush3.bf16.msra.mxu1 %v494_v40  ;;  %v495_v41 = vld [vmem:[#allocation9 + $0x8] sm:$0xff]   ;;  %v497_v43 = vld [vmem:[#allocation9 + $0x18] sm:$0xff]   ;;  %p575_p10 = scmp.ne.s32.totalorder %s386_s21, %s574_s22  ;;  %p580_p12 = scmp.lt.s32.totalorder %s574_s22, %s574_s22 }
  0x3c   :  { %81 = vadd.xlane.f32.xlu0 %v78_v1  ;;  %v399_v35 = vld [vmem:[%s744_s2] ss:$0 sm:$0xff]  ;;  %458 = vmatprep.subr.bf16.mxu1 %v609_v3  ;;  %v498_v44 = vld [vmem:[#allocation9 + $0x20] sm:$0xff]   ;;  %v499_v45 = vld [vmem:[#allocation9 + $0x28] sm:$0xff]  }
  0x3d   :  { %439 = vmatpush3.bf16.msra.mxu0 %v487_v16  ;;  %v496_v42 = vld [vmem:[#allocation9 + $0x10] sm:$0xff]   ;;  %v501_v47 = vld [vmem:[#allocation9 + $0x38] sm:$0xff]   ;;  %p581_p13 = por %p580_p12, %p579_p11 }
  0x3e   :  { %440 = vmatprep.subr.bf16.mxu0 %v609_v3  ;;  %v500_v46 = vld [vmem:[#allocation9 + $0x30] sm:$0xff]  }
  0x3f   :  { %459 = vmatpush3.bf16.msra.mxu1 %v495_v41  ;;  %v401_v48 = vld [vmem:[%s746_s4] ss:$0 sm:$0xff]  ;;  %p582_p0 = pnand %p581_p13, %p575_p10 }
  0x40   :  { %460 = vmatprep.subr.bf16.mxu1 %v609_v3 }
  0x41   :  { %441 = vmatpush3.bf16.msra.mxu0 %v488_v17 }
  0x42   :  { %442 = vmatprep.subr.bf16.mxu0 %v609_v3 }
  0x43   :  { %461 = vmatpush3.bf16.msra.mxu1 %v496_v42 }
  0x44   :  { %462 = vmatprep.subr.bf16.mxu1 %v609_v3 }
  0x45   :  { %443 = vmatpush3.bf16.msra.mxu0 %v489_v18 }
  0x46   :  { %444 = vmatprep.subr.bf16.mxu0 %v609_v3 }
  0x47   :  { %463 = vmatpush3.bf16.msra.mxu1 %v497_v43 }
  0x48   :  { %464 = vmatprep.subr.bf16.mxu1 %v609_v3 }
  0x49   :  { %445 = vmatpush3.bf16.msra.mxu0 %v490_v19 }
  0x4a   :  { %446 = vmatprep.subr.bf16.mxu0 %v609_v3 }
  0x4b   :  { %465 = vmatpush3.bf16.msra.mxu1 %v498_v44 }
  0x4c   :  { %466 = vmatprep.subr.bf16.mxu1 %v609_v3 }
  0x4d   :  { %447 = vmatpush3.bf16.msra.mxu0 %v491_v20 }
  0x4e   :  { %448 = vmatprep.subr.bf16.mxu0 %v609_v3 }
  0x4f   :  { %467 = vmatpush3.bf16.msra.mxu1 %v499_v45 }
  0x50   :  { %468 = vmatprep.subr.bf16.mxu1 %v609_v3 }
  0x51   :  { %449 = vmatpush3.bf16.msra.mxu0 %v492_v21 }
  0x52   :  { %450 = vmatprep.subr.bf16.mxu0 %v609_v3 }
  0x53   :  { %469 = vmatpush3.bf16.msra.mxu1 %v500_v46 }
  0x54   :  { %470 = vmatprep.subr.bf16.mxu1 %v609_v3 }
  0x55   :  { %451 = vmatpush3.bf16.msra.mxu0 %v493_v22 }
  0x57   :  { %471 = vmatpush3.bf16.msra.mxu1 %v501_v47 }
  0xc5   :  { %v80_v6 = vpop.xlane.xlu0 %79 }
  0xc6   :  { %v83_v7 = vmul.f32 0.03125, %v80_v6 }
  0xc8   :  { %v85_v8 = vsub.f32 %v77_v0, %v83_v7 }
  0xc9   :  { %v82_v9 = vpop.xlane.xlu0 %81 }
  0xca   :  { %v84_v10 = vmul.f32 0.03125, %v82_v9  ;;  %v90_v11 = vsel %vm89_vm0, %v85_v8, 0.0 }
  0xcb   :  { %v92_v12 = vmul.f32 %v90_v11, %v90_v11 }
  0xcc   :  { %v86_v13 = vsub.f32 %v78_v1, %v84_v10  ;;  %v400_v1 = vld [vmem:[%s748_s6] ss:$0 sm:$0xff] }
  0xcd   :  { %94 = vadd.xlane.f32.xlu1 %v92_v12 }
  0xce   :  { %v91_v14 = vsel %vm89_vm0, %v86_v13, 0.0 }
  0xcf   :  { %v93_v15 = vmul.f32 %v91_v14, %v91_v14 }
  0xd1   :  { %96 = vadd.xlane.f32.xlu1 %v93_v15 }
 0x15a   :  { %v95_v23 = vpop.xlane.xlu1 %94 }
 0x15b   :  { %v98_v24 = vmul.f32 0.03125, %v95_v23 }
 0x15d   :  { %v100_v25 = vadd.f32 1e-05, %v98_v24 }
 0x15e   :  { %v97_v26 = vpop.xlane.xlu1 %96 }
 0x15f   :  { %502 = vrsqrt.f32 %v100_v25  ;;  %v99_v27 = vmul.f32 0.03125, %v97_v26 }
 0x161   :  { %v101_v28 = vadd.f32 1e-05, %v99_v27 }
 0x163   :  { %504 = vrsqrt.f32 %v101_v28 }
 0x169   :  { %v503_v29 = vpop.eup %502 }
 0x16a   :  { %v104_v30 = vmul.f32 %v503_v29, %v90_v11 }
 0x16c   :  { %v113_v34 = vmul.f32 %v398_v31, %v104_v30 }
 0x16d   :  { %v505_v32 = vpop.eup %504 }
 0x16e   :  { %v105_v33 = vmul.f32 %v505_v32, %v91_v14  ;;  %v122_v37 = vadd.f32 %v399_v35, %v113_v34 }
 0x170   :  { %v114_v36 = vmul.f32 %v398_v31, %v105_v33  ;;  %v133_v2 = vadd.f32 %v400_v1, %v122_v37 }
 0x172   :  { %v123_v38 = vadd.f32 %v399_v35, %v114_v36 }
 0x174   :  { %v139_v39 = vpack.c.bf16 %v123_v38, %v122_v37  ;;  %v134_v6 = vadd.f32 %v400_v1, %v123_v38 }
 0x176   :  { %453 = vmatmul.mubr.bf16.vlgmr.msra.gmra.mrb[0].mxu0 %v139_v39 }
 0x249   :  { %v245_v49 = vpop.f32.mrb[0].mxu0 }
 0x24a   :  { %v454_v50 = vpop.f32.mrb[1].mxu0  ;;  %v246_v52 = vadd.f32 %v401_v48, %v245_v49 }
 0x24b   :  { %v248_v51 = vpop.f32.mrb[2].mxu0 }
 0x24c   :  { %v249_v53 = vadd.f32 %v401_v48, %v248_v51  ;;  %v455_v54 = vpop.f32.mrb[3].mxu0 }
 0x24e   :  { %v252_v55 = vpack.c.bf16 %v249_v53, %v246_v52 }
 0x250   :  { %v254_v56 = vmul.bf16 1027030327, %v252_v55  ;;  %v253_v62 = vmul.bf16 1056980736, %v252_v55 }
 0x252   :  { %v255_v57 = vmul.bf16 %v254_v56, %v252_v55 }
 0x254   :  { %v256_v58 = vmul.bf16 %v255_v57, %v252_v55 }
 0x256   :  { %v257_v59 = vadd.bf16 %v256_v58, %v252_v55 }
 0x258   :  { %v258_v60 = vmul.bf16 1061961548, %v257_v59 }
 0x25a   :  { %506 = vtanh.bf16 %v258_v60 }
 0x265   :  { %v507_v61 = vpop.eup %506 }
 0x266   :  { %v260_v63 = vadd.bf16 1065369472, %v507_v61 }
 0x268   :  { %v261_v0 = vmul.bf16 %v260_v63, %v253_v62 }
 0x26a   :  { %473 = vmatmul.mubr.bf16.vlgmr.msra.gmra.mrb[0].mxu1 %v261_v0 }
 0x33d   :  { %v362_v3 = vpop.f32.mrb[0].mxu1 }
 0x33e   :  { %v369_v4 = vadd.f32 %v362_v3, %v133_v2  ;;  %v474_v5 = vpop.f32.mrb[1].mxu1 }
 0x33f   :  { %v365_v7 = vpop.f32.mrb[2].mxu1 }
 0x340   :  { %378 = vst [vmem:[#allocation10] sm:$0xff] %v369_v4  ;;  %v370_v8 = vadd.f32 %v365_v7, %v134_v6  ;;  %v475_v9 = vpop.f32.mrb[3].mxu1 }
 0x342   :  { %379 = vst [vmem:[#allocation10 + $0x8] sm:$0xff] %v370_v8 }
 0x343   :  { %585 = shalt.err (!%p582_p0)
}
 0x344   :  { %s586_s24 = scalar_lea.hbm %s749_s7, 256 }
 0x345   :  { %p587_p1 = scmp.ne.s32.totalorder %s749_s7, %s586_s24  ;;  %p590_p2 = scmp.lt.u32.totalorder %s586_s24, %s749_s7 }
 0x347   :  { %p592_p3 = pnand %p590_p2, %p587_p1 }
 0x349   :  { %595 = shalt.err (!%p592_p3)
}
 0x34a   :  { %391 = dma.vmem_to_hbm [thread:$0]  %s386_s21, 256, %s749_s7, [#allocation6], %s606_s3, %s606_s3, %s607_s25  }
 0x34b   :  { %600 = dma.done.wait [#allocation6], 256  }
 0x34c   :  { %601 = vsyncadd [#allocation6], 4294967040 }
 0x34d   :  { %395 = vsyncpa [#allocation5], 1 }
 0x34e   :  { %396 = vsyncpa [#allocation8], 1 }
 0x34f   :  { %397 = vsyncpa [#allocation6], 1 }

</bundles_post_ra>
